<compile_context>
chip_gen: v7x
topology: tpu7x:2x2x1
jax: 0.10.0
libtpu: 0.0.40
codegen_flags: <defaults>
</compile_context>

<pallas_src>
import jax
import jax.numpy as jnp
from jax.experimental import pallas as pl
from jax.experimental.pallas import tpu as pltpu


def _round_up(x: int, m: int) -> int:
    return (x + m - 1) // m * m


def _vmem_capacity_bytes() -> int:
    try:
        return int(pltpu.get_tpu_info().vmem_capacity_bytes)
    except Exception:
        return 64 << 20  # conservative (v7x per-core VMEM)


# ------------------------------- kernel -------------------------------------
def make_encoder_kernel(H: int):
    """H = logical hidden size (gates are packed contiguously at H columns)."""

    def encoder_kernel(tok_ref, emb_row_ref, wx_ref, wh_ref, b_ref,
                       h0_ref, c0_ref, h_seq_ref, c_seq_ref, h_state, c_state):
        # Token ids were consumed by the embedding BlockSpec index_map (the row
        # gather happens on the pipelined DMA path, not in-kernel).
        del tok_ref
        t = pl.program_id(1)

        # New sequence (new b, t == 0): load the caller-provided initial state.
        @pl.when(t == 0)
        def _():
            h_state[...] = h0_ref[...]          # (1, Hp) f32, zero-padded
            c_state[...] = c0_ref[...]

        x = emb_row_ref[...]                    # (1, Ep)  bf16
        h_b = h_state[...].astype(x.dtype)      # (1, Hp)  bf16 (f32 master copy kept)

        # Two MXU dots against the VMEM-resident weights; f32 accumulation.
        gates = (jnp.dot(x, wx_ref[...], preferred_element_type=jnp.float32)
                 + jnp.dot(h_b, wh_ref[...], preferred_element_type=jnp.float32)
                 + b_ref[...])                  # (1, G) f32, gates packed [i|f|g|o]

        i_g = jax.nn.sigmoid(gates[:, 0 * H:1 * H])
        f_g = jax.nn.sigmoid(gates[:, 1 * H:2 * H])
        g_g = jnp.tanh(gates[:, 2 * H:3 * H])
        o_g = jax.nn.sigmoid(gates[:, 3 * H:4 * H])

        c_new = f_g * c_state[:, :H] + i_g * g_g          # (1, H) f32
        h_new = o_g * jnp.tanh(c_new)

        c_state[:, :H] = c_new                  # padded lanes stay 0
        h_state[:, :H] = h_new

        # Full-width (Hp-lane) unmasked stores into the VMEM-resident outputs.
        h_seq_ref[pl.ds(t, 1), :] = h_state[...]
        c_seq_ref[pl.ds(t, 1), :] = c_state[...]

    return encoder_kernel


# --------------------------- one-time weight prep ----------------------------
def prepare_params(params, weight_dtype=jnp.bfloat16):
    """Hoisted one-time prep: transpose, pack gates contiguously, pad only the
    totals to lane multiples, cast weights/embedding to bf16 (bias stays f32)."""
    emb = params["embedding"]
    w_ih, w_hh = params["weight_ih"], params["weight_hh"]
    b_fused = (params["bias_ih"] + params["bias_hh"]).astype(jnp.float32)

    V, E = emb.shape
    H = w_hh.shape[1]
    Ep = _round_up(E, 128)
    Hp = _round_up(H, 128)
    G = _round_up(4 * H, 128)          # packed gate width (128 for H=32)

    # (V, 1, Ep): gathered block's last two dims == full array dims.
    emb_p = jnp.zeros((V, 1, Ep), weight_dtype).at[:, 0, :E].set(
        emb.astype(weight_dtype))

    # w_ih.T is (E, 4H) with gates already contiguous [i|f|g|o].
    wx = jnp.zeros((Ep, G), weight_dtype).at[:E, :4 * H].set(
        w_ih.T.astype(weight_dtype))
    wh = jnp.zeros((Hp, G), weight_dtype).at[:H, :4 * H].set(
        w_hh.T.astype(weight_dtype))
    bias = jnp.zeros((1, G), jnp.float32).at[0, :4 * H].set(b_fused)

    return {"emb": emb_p, "wx": wx, "wh": wh, "b": bias,
            "E": E, "H": H, "Ep": Ep, "Hp": Hp, "G": G, "V": V,
            "weight_dtype": weight_dtype}


# ------------------------------- forward ------------------------------------
def encode_sequence(tokens, prepped, hidden):
    """Run T LSTM steps for B sequences inside ONE pallas_call.

    tokens : int32 (B, T)
    hidden : (h0, c0), each reshapeable to (B, H)
    returns: h_seq (B, T, H), (h_n, c_n) each (B, H)
    """
    tokens = tokens.astype(jnp.int32)
    B, T = tokens.shape
    H = prepped["H"]
    Ep, Hp, G = prepped["Ep"], prepped["Hp"], prepped["G"]
    wdt = prepped["weight_dtype"]
    dt_bytes = jnp.dtype(wdt).itemsize

    # One-time state padding (outside the token loop).
    h0 = jnp.zeros((B, 1, Hp), jnp.float32).at[:, 0, :H].set(
        hidden[0].reshape(B, H).astype(jnp.float32))
    c0 = jnp.zeros((B, 1, Hp), jnp.float32).at[:, 0, :H].set(
        hidden[1].reshape(B, H).astype(jnp.float32))

    # Explicit VMEM budget: (double-buffered) weights + small I/O + scratch,
    # capped by the actual device VMEM capacity.
    weight_bytes = (Ep * G + Hp * G) * dt_bytes + G * 4
    io_bytes = Ep * dt_bytes + 2 * Hp * 4 + 2 * T * Hp * 4
    scratch_bytes = 2 * Hp * 4
    vmem_need = 2 * (weight_bytes + io_bytes) + scratch_bytes + (4 << 20)
    vmem_limit = int(min(vmem_need, int(0.9 * _vmem_capacity_bytes())))

    grid_spec = pltpu.PrefetchScalarGridSpec(
        num_scalar_prefetch=1,                 # token ids -> SMEM, drive gather
        grid=(B, T),                           # B parallel, T sequential carry
        in_specs=[
            # one embedding row per step, gathered on the DMA path
            pl.BlockSpec((None, 1, Ep), lambda b, t, tok: (tok[b, t], 0, 0)),
            # resident LSTM weights / bias (constant index_map -> DMA'd once)
            pl.BlockSpec((Ep, G), lambda b, t, tok: (0, 0)),
            pl.BlockSpec((Hp, G), lambda b, t, tok: (0, 0)),
            pl.BlockSpec((1, G), lambda b, t, tok: (0, 0)),
            # initial state, one row per sequence
            pl.BlockSpec((None, 1, Hp), lambda b, t, tok: (b, 0, 0)),
            pl.BlockSpec((None, 1, Hp), lambda b, t, tok: (b, 0, 0)),
        ],
        out_specs=(
            # whole per-sequence output slab stays VMEM-resident across T
            pl.BlockSpec((None, T, Hp), lambda b, t, tok: (b, 0, 0)),
            pl.BlockSpec((None, T, Hp), lambda b, t, tok: (b, 0, 0)),
        ),
        scratch_shapes=[pltpu.VMEM((1, Hp), jnp.float32),   # h carry (f32)
                        pltpu.VMEM((1, Hp), jnp.float32)],  # c carry (f32)
    )

    h_seq_p, c_seq_p = pl.pallas_call(
        make_encoder_kernel(H),
        out_shape=(jax.ShapeDtypeStruct((B, T, Hp), jnp.float32),
                   jax.ShapeDtypeStruct((B, T, Hp), jnp.float32)),
        grid_spec=grid_spec,
        compiler_params=pltpu.CompilerParams(
            dimension_semantics=("parallel", "arbitrary"),
            vmem_limit_bytes=vmem_limit),
    )(tokens, prepped["emb"], prepped["wx"], prepped["wh"], prepped["b"],
      h0, c0)

    h_seq = h_seq_p[:, :, :H]
    h_n = h_seq[:, -1, :]
    c_n = c_seq_p[:, -1, :H]
    return h_seq, (h_n, c_n)


def encoder_forward(tok, prepped, hidden):
    """Exact module semantics: one token step.
    tok: int32 (1,); hidden: (h0, c0) each (1, 1, H).
    Returns (output, (h_n, c_n)) matching torch.nn.LSTM with seq_len=1."""
    H = prepped["H"]
    h_seq, (h_n, c_n) = encode_sequence(tok.reshape(1, 1), prepped, hidden)
    out = h_seq.reshape(1, 1, H)
    return out, (out, c_n.reshape(1, 1, H))


# ------------------------------ init / reference ----------------------------
def init_params(key, num_embeddings, embedding_dim, hidden_size):
    k1, k2, k3, k4, k5 = jax.random.split(key, 5)
    H, E = hidden_size, embedding_dim
    s = 1.0 / jnp.sqrt(H)
    return {
        "embedding": jax.random.normal(k1, (num_embeddings, E), jnp.float32),
        "weight_ih": jax.random.uniform(k2, (4 * H, E), jnp.float32, -s, s),
        "weight_hh": jax.random.uniform(k3, (4 * H, H), jnp.float32, -s, s),
        "bias_ih": jax.random.uniform(k4, (4 * H,), jnp.float32, -s, s),
        "bias_hh": jax.random.uniform(k5, (4 * H,), jnp.float32, -s, s),
    }


def reference_sequence(tokens, params, hidden, weight_dtype=jnp.float32):
    """Pure-JAX reference of the torch Embedding+LSTM unrolled over T steps.
    weight_dtype=bf16 mirrors the kernel exactly (bf16 weight storage and the
    per-step bf16 cast of h before the recurrent matmul; f32 state)."""
    def q(x):
        return x.astype(weight_dtype).astype(jnp.float32)

    emb = q(params["embedding"])
    w_ih, w_hh = q(params["weight_ih"]), q(params["weight_hh"])
    b = (params["bias_ih"] + params["bias_hh"]).astype(jnp.float32)[None, :]
    H = params["weight_hh"].shape[1]
    B, T = tokens.shape
    h = hidden[0].reshape(B, H).astype(jnp.float32)
    c = hidden[1].reshape(B, H).astype(jnp.float32)

    hp = jax.lax.Precision.HIGHEST
    hs = []
    for t in range(T):
        x = emb[tokens[:, t]]                        # (B, E)
        gates = (jnp.dot(x, w_ih.T, precision=hp)
                 + jnp.dot(q(h), w_hh.T, precision=hp) + b)
        i = jax.nn.sigmoid(gates[:, 0:H])
        f = jax.nn.sigmoid(gates[:, H:2 * H])
        g = jnp.tanh(gates[:, 2 * H:3 * H])
        o = jax.nn.sigmoid(gates[:, 3 * H:4 * H])
        c = f * c + i * g
        h = o * jnp.tanh(c)
        hs.append(h)
    return jnp.stack(hs, axis=1), (h, c)


# ---------------------------------- main -------------------------------------
if __name__ == "__main__":
    num_embeddings, embedding_dim, hidden_size = 16, 32, 32

    root = jax.random.PRNGKey(0)
    k_params, k_tok, k_h, k_c = jax.random.split(root, 4)
    params = init_params(k_params, num_embeddings, embedding_dim, hidden_size)
    prepped = prepare_params(params)       # one-time: pack/transpose/pad/bf16

    # ---- exact module semantics: forward(x, hidden) for one token ----------
    tok = jnp.array([5], dtype=jnp.int32)
    hidden = (jnp.zeros((1, 1, hidden_size), jnp.float32),   # init_hidden()
              jnp.zeros((1, 1, hidden_size), jnp.float32))
    out, (h_n, c_n) = encoder_forward(tok, prepped, hidden)
    jax.block_until_ready((out, h_n, c_n))

    ref_hs, (ref_h, ref_c) = reference_sequence(
        tok.reshape(1, 1), params, hidden, weight_dtype=jnp.bfloat16)
    assert jnp.allclose(out.reshape(1, -1), ref_h, atol=2e-3), "1-step h mismatch (bf16 ref)"
    assert jnp.allclose(c_n.reshape(1, -1), ref_c, atol=2e-3), "1-step c mismatch (bf16 ref)"
    ref_hs32, (ref_h32, ref_c32) = reference_sequence(
        tok.reshape(1, 1), params, hidden, weight_dtype=jnp.float32)
    assert jnp.allclose(out.reshape(1, -1), ref_h32, atol=5e-2), "1-step h mismatch (f32 ref)"

    # ---- weight-resident multi-step drive: B=2 sequences, T=8 tokens -------
    B, T = 2, 8
    tokens = jax.random.randint(k_tok, (B, T), 0, num_embeddings, dtype=jnp.int32)
    h0 = 0.1 * jax.random.normal(k_h, (B, hidden_size), jnp.float32)
    c0 = 0.1 * jax.random.normal(k_c, (B, hidden_size), jnp.float32)

    h_seq, (h_last, c_last) = encode_sequence(tokens, prepped, (h0, c0))
    jax.block_until_ready((h_seq, h_last, c_last))

    ref_seq, (ref_hT, ref_cT) = reference_sequence(
        tokens, params, (h0, c0), weight_dtype=jnp.bfloat16)
    assert jnp.allclose(h_seq, ref_seq, atol=2e-3), "sequence h mismatch (bf16 ref)"
    assert jnp.allclose(h_last, ref_hT, atol=2e-3), "final h mismatch (bf16 ref)"
    assert jnp.allclose(c_last, ref_cT, atol=2e-3), "final c mismatch (bf16 ref)"

    ref_seq32, (_, ref_c32T) = reference_sequence(
        tokens, params, (h0, c0), weight_dtype=jnp.float32)
    assert jnp.allclose(h_seq, ref_seq32, atol=5e-2), "sequence h mismatch (f32 ref)"
    assert jnp.allclose(c_last, ref_c32T, atol=5e-2), "final c mismatch (f32 ref)"

    print("KERNEL_OK")
</pallas_src>

<mosaic_0001>
module attributes {stable_mosaic.version = 11 : i64} {
  func.func @encoder_kernel(%arg0: i32, %arg1: i32, %arg2: memref<1x1xi32, #tpu.memory_space<smem>>, %arg3: memref<1x1x128xbf16, #tpu.memory_space<vmem>>, %arg4: memref<128x128xbf16, #tpu.memory_space<vmem>>, %arg5: memref<128x128xbf16, #tpu.memory_space<vmem>>, %arg6: memref<1x128xf32, #tpu.memory_space<vmem>>, %arg7: memref<1x1x128xf32, #tpu.memory_space<vmem>>, %arg8: memref<1x1x128xf32, #tpu.memory_space<vmem>>, %arg9: memref<1x1x128xf32, #tpu.memory_space<vmem>>, %arg10: memref<1x1x128xf32, #tpu.memory_space<vmem>>, %arg11: memref<1x128xf32, #tpu.memory_space<vmem>>, %arg12: memref<1x128xf32, #tpu.memory_space<vmem>>) attributes {dimension_semantics = [#tpu.dimension_semantics<parallel>, #tpu.dimension_semantics<arbitrary>], iteration_bounds = array<i64: 1, 1>, scalar_prefetch = 1 : i64, scratch_operands = 2 : i64, tpu.core_type = #tpu.core_type<tc>, window_params = [{transform_indices = @transform_0, window_bounds = array<i64: 1, 1, 128>}, {pipeline_mode = #tpu.pipeline_mode<synchronous>, transform_indices = @transform_1, window_bounds = array<i64: 128, 128>}, {pipeline_mode = #tpu.pipeline_mode<synchronous>, transform_indices = @transform_2, window_bounds = array<i64: 128, 128>}, {pipeline_mode = #tpu.pipeline_mode<synchronous>, transform_indices = @transform_3, window_bounds = array<i64: 1, 128>}, {transform_indices = @transform_4, window_bounds = array<i64: 1, 1, 128>}, {transform_indices = @transform_5, window_bounds = array<i64: 1, 1, 128>}, {transform_indices = @transform_6, window_bounds = array<i64: 1, 1, 128>}, {transform_indices = @transform_7, window_bounds = array<i64: 1, 1, 128>}]} {
    %c0_i32 = arith.constant 0 : i32
    %0 = arith.cmpi eq, %arg1, %c0_i32 : i32
    %1 = arith.extui %0 : i1 to i32
    %c0_i32_0 = arith.constant 0 : i32
    %2 = arith.cmpi ne, %1, %c0_i32_0 : i32
    scf.if %2 {
      %c0_29 = arith.constant 0 : index
      %c0_30 = arith.constant 0 : index
      %c0_31 = arith.constant 0 : index
      %52 = vector.load %arg7[%c0_29, %c0_30, %c0_31] : memref<1x1x128xf32, #tpu.memory_space<vmem>>, vector<1x1x128xf32>
      %53 = vector.shape_cast %52 : vector<1x1x128xf32> to vector<1x128xf32>
      %c0_32 = arith.constant 0 : index
      %c0_33 = arith.constant 0 : index
      %54 = vector.load %arg11[%c0_32, %c0_33] : memref<1x128xf32, #tpu.memory_space<vmem>>, vector<1x128xf32>
      tpu.vector_store %arg11[%c0_32, %c0_33], %53 {strides = array<i32>} : memref<1x128xf32, #tpu.memory_space<vmem>>, vector<1x128xf32>,
      %c0_34 = arith.constant 0 : index
      %c0_35 = arith.constant 0 : index
      %c0_36 = arith.constant 0 : index
      %55 = vector.load %arg8[%c0_34, %c0_35, %c0_36] : memref<1x1x128xf32, #tpu.memory_space<vmem>>, vector<1x1x128xf32>
      %56 = vector.shape_cast %55 : vector<1x1x128xf32> to vector<1x128xf32>
      %c0_37 = arith.constant 0 : index
      %c0_38 = arith.constant 0 : index
      %57 = vector.load %arg12[%c0_37, %c0_38] : memref<1x128xf32, #tpu.memory_space<vmem>>, vector<1x128xf32>
      tpu.vector_store %arg12[%c0_37, %c0_38], %56 {strides = array<i32>} : memref<1x128xf32, #tpu.memory_space<vmem>>, vector<1x128xf32>,
    } else {
    }
    %c0 = arith.constant 0 : index
    %c0_1 = arith.constant 0 : index
    %c0_2 = arith.constant 0 : index
    %3 = vector.load %arg3[%c0, %c0_1, %c0_2] : memref<1x1x128xbf16, #tpu.memory_space<vmem>>, vector<1x1x128xbf16>
    %4 = vector.shape_cast %3 : vector<1x1x128xbf16> to vector<1x128xbf16>
    %c0_3 = arith.constant 0 : index
    %c0_4 = arith.constant 0 : index
    %5 = vector.load %arg11[%c0_3, %c0_4] : memref<1x128xf32, #tpu.memory_space<vmem>>, vector<1x128xf32>
    %6 = arith.truncf %5 : vector<1x128xf32> to vector<1x128xbf16>
    %c0_5 = arith.constant 0 : index
    %c0_6 = arith.constant 0 : index
    %7 = vector.load %arg4[%c0_5, %c0_6] : memref<128x128xbf16, #tpu.memory_space<vmem>>, vector<128x128xbf16>
    %cst = arith.constant dense<0.000000e+00> : vector<1x128xf32>
    %8 = tpu.matmul %4, %7, %cst {dimension_numbers = #tpu.dot_dimension_numbers<[1], [0], [0], [1], [0, 0, 1, 1], [], []>} : vector<1x128xbf16>, vector<128x128xbf16>, vector<1x128xf32> -> vector<1x128xf32>
    %c0_7 = arith.constant 0 : index
    %c0_8 = arith.constant 0 : index
    %9 = vector.load %arg5[%c0_7, %c0_8] : memref<128x128xbf16, #tpu.memory_space<vmem>>, vector<128x128xbf16>
    %cst_9 = arith.constant dense<0.000000e+00> : vector<1x128xf32>
    %10 = tpu.matmul %6, %9, %cst_9 {dimension_numbers = #tpu.dot_dimension_numbers<[1], [0], [0], [1], [0, 0, 1, 1], [], []>} : vector<1x128xbf16>, vector<128x128xbf16>, vector<1x128xf32> -> vector<1x128xf32>
    %11 = arith.addf %8, %10 : vector<1x128xf32>
    %c0_10 = arith.constant 0 : index
    %c0_11 = arith.constant 0 : index
    %12 = vector.load %arg6[%c0_10, %c0_11] : memref<1x128xf32, #tpu.memory_space<vmem>>, vector<1x128xf32>
    %13 = arith.addf %11, %12 : vector<1x128xf32>
    %14 = vector.extract_strided_slice %13 {offsets = [0, 0], sizes = [1, 32], strides = [1, 1]} : vector<1x128xf32> to vector<1x32xf32>
    %15 = arith.negf %14 : vector<1x32xf32>
    %16 = math.exp %15 : vector<1x32xf32>
    %cst_12 = arith.constant 1.000000e+00 : f32
    %17 = vector.broadcast %cst_12 : f32 to vector<1x32xf32>
    %18 = arith.addf %17, %16 : vector<1x32xf32>
    %19 = arith.divf %17, %18 : vector<1x32xf32>
    %20 = vector.extract_strided_slice %13 {offsets = [0, 32], sizes = [1, 32], strides = [1, 1]} : vector<1x128xf32> to vector<1x32xf32>
    %21 = arith.negf %20 : vector<1x32xf32>
    %22 = math.exp %21 : vector<1x32xf32>
    %cst_13 = arith.constant 1.000000e+00 : f32
    %23 = vector.broadcast %cst_13 : f32 to vector<1x32xf32>
    %24 = arith.addf %23, %22 : vector<1x32xf32>
    %25 = arith.divf %23, %24 : vector<1x32xf32>
    %26 = vector.extract_strided_slice %13 {offsets = [0, 64], sizes = [1, 32], strides = [1, 1]} : vector<1x128xf32> to vector<1x32xf32>
    %27 = math.tanh %26 : vector<1x32xf32>
    %28 = vector.extract_strided_slice %13 {offsets = [0, 96], sizes = [1, 32], strides = [1, 1]} : vector<1x128xf32> to vector<1x32xf32>
    %29 = arith.negf %28 : vector<1x32xf32>
    %30 = math.exp %29 : vector<1x32xf32>
    %cst_14 = arith.constant 1.000000e+00 : f32
    %31 = vector.broadcast %cst_14 : f32 to vector<1x32xf32>
    %32 = arith.addf %31, %30 : vector<1x32xf32>
    %33 = arith.divf %31, %32 : vector<1x32xf32>
    %c0_15 = arith.constant 0 : index
    %c0_16 = arith.constant 0 : index
    %34 = vector.load %arg12[%c0_15, %c0_16] : memref<1x128xf32, #tpu.memory_space<vmem>>, vector<1x32xf32>
    %35 = arith.mulf %25, %34 : vector<1x32xf32>
    %36 = arith.mulf %19, %27 : vector<1x32xf32>
    %37 = arith.addf %35, %36 : vector<1x32xf32>
    %38 = math.tanh %37 : vector<1x32xf32>
    %39 = arith.mulf %33, %38 : vector<1x32xf32>
    %c0_17 = arith.constant 0 : index
    %c0_18 = arith.constant 0 : index
    %40 = vector.load %arg12[%c0_17, %c0_18] : memref<1x128xf32, #tpu.memory_space<vmem>>, vector<1x32xf32>
    tpu.vector_store %arg12[%c0_17, %c0_18], %37 {strides = array<i32>} : memref<1x128xf32, #tpu.memory_space<vmem>>, vector<1x32xf32>,
    %c0_19 = arith.constant 0 : index
    %c0_20 = arith.constant 0 : index
    %41 = vector.load %arg11[%c0_19, %c0_20] : memref<1x128xf32, #tpu.memory_space<vmem>>, vector<1x32xf32>
    tpu.vector_store %arg11[%c0_19, %c0_20], %39 {strides = array<i32>} : memref<1x128xf32, #tpu.memory_space<vmem>>, vector<1x32xf32>,
    %c0_21 = arith.constant 0 : index
    %c0_22 = arith.constant 0 : index
    %42 = vector.load %arg11[%c0_21, %c0_22] : memref<1x128xf32, #tpu.memory_space<vmem>>, vector<1x128xf32>
    %c0_23 = arith.constant 0 : index
    %43 = arith.index_cast %arg1 : i32 to index
    %c0_24 = arith.constant 0 : index
    %44 = vector.load %arg9[%c0_23, %43, %c0_24] : memref<1x1x128xf32, #tpu.memory_space<vmem>>, vector<1x1x128xf32>
    %45 = vector.shape_cast %44 : vector<1x1x128xf32> to vector<1x128xf32>
    %46 = vector.shape_cast %42 : vector<1x128xf32> to vector<1x1x128xf32>
    tpu.vector_store %arg9[%c0_23, %43, %c0_24], %46 {strides = array<i32>} : memref<1x1x128xf32, #tpu.memory_space<vmem>>, vector<1x1x128xf32>,
    %c0_25 = arith.constant 0 : index
    %c0_26 = arith.constant 0 : index
    %47 = vector.load %arg12[%c0_25, %c0_26] : memref<1x128xf32, #tpu.memory_space<vmem>>, vector<1x128xf32>
    %c0_27 = arith.constant 0 : index
    %48 = arith.index_cast %arg1 : i32 to index
    %c0_28 = arith.constant 0 : index
    %49 = vector.load %arg10[%c0_27, %48, %c0_28] : memref<1x1x128xf32, #tpu.memory_space<vmem>>, vector<1x1x128xf32>
    %50 = vector.shape_cast %49 : vector<1x1x128xf32> to vector<1x128xf32>
    %51 = vector.shape_cast %47 : vector<1x128xf32> to vector<1x1x128xf32>
    tpu.vector_store %arg10[%c0_27, %48, %c0_28], %51 {strides = array<i32>} : memref<1x1x128xf32, #tpu.memory_space<vmem>>, vector<1x1x128xf32>,
    return
  }
  func.func @transform_0(%arg0: i32, %arg1: i32, %arg2: memref<1x1xi32, #tpu.memory_space<smem>>) -> (i32, i32, i32) {
    %0 = arith.index_cast %arg0 : i32 to index
    %1 = arith.index_cast %arg1 : i32 to index
    %2 = memref.load %arg2[%0, %1] : memref<1x1xi32, #tpu.memory_space<smem>>
    %c0_i32 = arith.constant 0 : i32
    %c0_i32_0 = arith.constant 0 : i32
    %c0_i32_1 = arith.constant 0 : i32
    return %2, %c0_i32, %c0_i32_0 : i32, i32, i32
  }
  func.func @transform_1(%arg0: i32, %arg1: i32, %arg2: memref<1x1xi32, #tpu.memory_space<smem>>) -> (i32, i32) {
    %c0_i32 = arith.constant 0 : i32
    %c0_i32_0 = arith.constant 0 : i32
    %c0_i32_1 = arith.constant 0 : i32
    return %c0_i32, %c0_i32_0 : i32, i32
  }
  func.func @transform_2(%arg0: i32, %arg1: i32, %arg2: memref<1x1xi32, #tpu.memory_space<smem>>) -> (i32, i32) {
    %c0_i32 = arith.constant 0 : i32
    %c0_i32_0 = arith.constant 0 : i32
    %c0_i32_1 = arith.constant 0 : i32
    return %c0_i32, %c0_i32_0 : i32, i32
  }
  func.func @transform_3(%arg0: i32, %arg1: i32, %arg2: memref<1x1xi32, #tpu.memory_space<smem>>) -> (i32, i32) {
    %c0_i32 = arith.constant 0 : i32
    %c0_i32_0 = arith.constant 0 : i32
    %c0_i32_1 = arith.constant 0 : i32
    return %c0_i32, %c0_i32_0 : i32, i32
  }
  func.func @transform_4(%arg0: i32, %arg1: i32, %arg2: memref<1x1xi32, #tpu.memory_space<smem>>) -> (i32, i32, i32) {
    %c0_i32 = arith.constant 0 : i32
    %c0_i32_0 = arith.constant 0 : i32
    %c0_i32_1 = arith.constant 0 : i32
    return %arg0, %c0_i32, %c0_i32_0 : i32, i32, i32
  }
  func.func @transform_5(%arg0: i32, %arg1: i32, %arg2: memref<1x1xi32, #tpu.memory_space<smem>>) -> (i32, i32, i32) {
    %c0_i32 = arith.constant 0 : i32
    %c0_i32_0 = arith.constant 0 : i32
    %c0_i32_1 = arith.constant 0 : i32
    return %arg0, %c0_i32, %c0_i32_0 : i32, i32, i32
  }
  func.func @transform_6(%arg0: i32, %arg1: i32, %arg2: memref<1x1xi32, #tpu.memory_space<smem>>) -> (i32, i32, i32) {
    %c0_i32 = arith.constant 0 : i32
    %c0_i32_0 = arith.constant 0 : i32
    %c0_i32_1 = arith.constant 0 : i32
    return %arg0, %c0_i32, %c0_i32_0 : i32, i32, i32
  }
  func.func @transform_7(%arg0: i32, %arg1: i32, %arg2: memref<1x1xi32, #tpu.memory_space<smem>>) -> (i32, i32, i32) {
    %c0_i32 = arith.constant 0 : i32
    %c0_i32_0 = arith.constant 0 : i32
    %c0_i32_1 = arith.constant 0 : i32
    return %arg0, %c0_i32, %c0_i32_0 : i32, i32, i32
  }
}

</mosaic_0001>

<bundles_post_ra>
// kernel: tpu_custom_call.1
= control target key start
LH: loop header
LB: loop body
LE: loop exit
PB: predicated region body
PF: predicated region fallthrough
CT: control target
= control target key end

     0   :  { %15 = vsyncpa [#allocation7], 0  ;;  %s727_s0 = inlined_call_operand.<no memory space> [shape: s32[1,1], index: 0, kind: input, shape index: {}]   ;;  %s728_s1 = inlined_call_operand.vmem [shape: bf16[16,1,128], index: 1, kind: input, shape index: {}]   ;;  %s729_s2 = inlined_call_operand.hbm [shape: bf16[128,128], index: 2, kind: input, shape index: {}]   ;;  %s730_s3 = inlined_call_operand.hbm [shape: bf16[128,128], index: 3, kind: input, shape index: {}]   ;;  %s731_s4 = inlined_call_operand.vmem [shape: f32[1,128], index: 4, kind: input, shape index: {}]   ;;  %s732_s5 = inlined_call_operand.vmem [shape: f32[1,1,128], index: 5, kind: input, shape index: {}]   ;;  %s733_s6 = inlined_call_operand.vmem [shape: f32[1,1,128], index: 6, kind: input, shape index: {}]   ;;  %s734_s7 = inlined_call_operand.hbm [shape: f32[1,1,128], index: 7, kind: output, shape index: {0}]   ;;  %s735_s8 = inlined_call_operand.hbm [shape: f32[1,1,128], index: 8, kind: output, shape index: {1}]  }
   0x1   :  { %16 = vsyncpa [#allocation10], 0 }
   0x2   :  { %17 = vsyncpa [#allocation8], 0 }
   0x3   :  { %18 = vsyncpa [#allocation13], 0  ;;  %s595_s27 = smov [#allocation6]   ;;  %s499_s9 = scalar_lea.hbm %s729_s2, 1024 }
   0x4   :  { %s37_s28 = sshll.u32 %s595_s27, 4  ;;  %p500_p0 = scmp.ne.s32.totalorder %s729_s2, %s499_s9  ;;  %s38_s28 = int_to_ptr.vmem [resolvable:$true] %s37_s28 }
   0x5   :  { %p503_p1 = scmp.lt.u32.totalorder %s499_s9, %s729_s2 }
   0x7   :  { %p505_p2 = pnand %p503_p1, %p500_p0 }
   0x9   :  { %508 = shalt.err (!%p505_p2)
}
   0xa   :  { %s509_s14 = scalar_lea.vmem %s38_s28, 1024  ;;  %p514_p4 = scmp.lt.s32.totalorder %s38_s28, %s38_s28 }
   0xb   :  { %p510_p3 = scmp.ne.s32.totalorder %s38_s28, %s509_s14  ;;  %p515_p5 = scmp.lt.s32.totalorder %s509_s14, %s509_s14 }
   0xd   :  { %p516_p6 = por %p515_p5, %p514_p4 }
   0xf   :  { %p517_p7 = pnand %p516_p6, %p510_p3 }
  0x11   :  { %520 = shalt.err (!%p517_p7)
}
  0x12   :  { %s596_s15 = smov 64   ;;  %s597_s16 = smov 4  }
  0x13   :  { %43 = dma.hbm_to_vmem [thread:$0]  %s729_s2, 1024, %s38_s28, [#allocation7], %s596_s15, %s596_s15, %s597_s16  }
  0x14   :  { %s598_s19 = smov [#allocation9]   ;;  %s521_s23 = scalar_lea.hbm %s730_s3, 1024 }
  0x15   :  { %s49_s20 = sshll.u32 %s598_s19, 4  ;;  %p522_p8 = scmp.ne.s32.totalorder %s730_s3, %s521_s23  ;;  %s50_s20 = int_to_ptr.vmem [resolvable:$true] %s49_s20 }
  0x16   :  { %p525_p9 = scmp.lt.u32.totalorder %s521_s23, %s730_s3 }
  0x18   :  { %p527_p10 = pnand %p525_p9, %p522_p8 }
  0x1a   :  { %530 = shalt.err (!%p527_p10)
}
  0x1b   :  { %s531_s29 = scalar_lea.vmem %s50_s20, 1024  ;;  %p536_p12 = scmp.lt.s32.totalorder %s50_s20, %s50_s20 }
  0x1c   :  { %p532_p11 = scmp.ne.s32.totalorder %s50_s20, %s531_s29  ;;  %p537_p13 = scmp.lt.s32.totalorder %s531_s29, %s531_s29 }
  0x1e   :  { %p538_p0 = por %p537_p13, %p536_p12 }
  0x20   :  { %p539_p1 = pnand %p538_p0, %p532_p11 }
  0x22   :  { %542 = shalt.err (!%p539_p1)
}
  0x23   :  { %55 = dma.hbm_to_vmem [thread:$0]  %s730_s3, 1024, %s50_s20, [#allocation10], %s596_s15, %s596_s15, %s597_s16  }
  0x24   :  { %587 = dma.done.wait [#allocation7], 1024  }
  0x25   :  { %588 = vsyncadd [#allocation7], 4294966272 }
  0x26   :  { %589 = dma.done.wait [#allocation10], 1024  }
  0x27   :  { %590 = vsyncadd [#allocation10], 4294966272  ;;  %v599_v0 = vmov 0.0   ;;  %vm600_vm0 = vmmov 0   ;;  %v475_v1 = vld [vmem:[#allocation9] sm:$0xff]   ;;  %v477_v3 = vld [vmem:[#allocation9 + $0x8] sm:$0xff]  }
  0x28   :  { %425 = vmatprep.subr.bf16.mxu0 %v599_v0  ;;  %445 = vmatprep.subr.bf16.mxu1 %v599_v0  ;;  %v476_v2 = vld [vmem:[#allocation6] sm:$0xff]   ;;  %v478_v4 = vld [vmem:[#allocation6 + $0x8] sm:$0xff]   ;;  %v479_v5 = vld [vmem:[#allocation9 + $0x10] sm:$0xff]   ;;  %p79_p2 = scmp.lt.s32.totalorder %s727_s0, 15  ;;  %vm345_vm1 = vcmask 253952  }
  0x29   :  { %441 = vmatprep.mubr.msk.bf16.mxu0 %vm600_vm0, %v599_v0  ;;  %461 = vmatprep.mubr.msk.bf16.mxu1 %vm600_vm0, %v599_v0  ;;  %v480_v6 = vld [vmem:[#allocation6 + $0x10] sm:$0xff]   ;;  %v481_v7 = vld [vmem:[#allocation9 + $0x18] sm:$0xff]   ;;  %v483_v9 = vld [vmem:[#allocation9 + $0x20] sm:$0xff]  }
  0x2a   :  { %426 = vmatpush3.bf16.msra.mxu0 %v475_v1  ;;  %446 = vmatpush3.bf16.msra.mxu1 %v476_v2  ;;  %v482_v8 = vld [vmem:[#allocation6 + $0x18] sm:$0xff]   ;;  %v484_v10 = vld [vmem:[#allocation6 + $0x20] sm:$0xff]   ;;  %v485_v12 = vld [vmem:[#allocation9 + $0x28] sm:$0xff]   ;;  %s737_s0 = smov (!%p79_p2, %s727_s0), 15 }
  0x2b   :  { %427 = vmatprep.subr.bf16.mxu0 %v599_v0  ;;  %447 = vmatprep.subr.bf16.mxu1 %v599_v0  ;;  %v91_v11 = vld [vmem:[%s732_s5] sm:$0x1]  ;;  %v486_v13 = vld [vmem:[#allocation6 + $0x28] sm:$0xff]   ;;  %v487_v14 = vld [vmem:[#allocation9 + $0x30] sm:$0xff]   ;;  %s81_s14 = scalar_lea.vmem %s728_s1, %s737_s0  ;;  %s601_s0 = smov 32  }
  0x2c   :  { %92 = vst [vmem:[#allocation2] sm:$0x1] %v91_v11  ;;  %v488_v15 = vld [vmem:[#allocation6 + $0x30] sm:$0xff]   ;;  %v489_v16 = vld [vmem:[#allocation9 + $0x38] sm:$0xff]   ;;  %s602_s1 = smov 96  }
  0x2d   :  { %v490_v18 = vld [vmem:[#allocation6 + $0x38] sm:$0xff]  }
  0x2e   :  { %428 = vmatpush3.bf16.msra.mxu0 %v477_v3  ;;  %448 = vmatpush3.bf16.msra.mxu1 %v478_v4  ;;  %v95_v20 = vld [vmem:[%s81_s14] sm:$0x1] }
  0x2f   :  { %429 = vmatprep.subr.bf16.mxu0 %v599_v0  ;;  %449 = vmatprep.subr.bf16.mxu1 %v599_v0  ;;  %v93_v21 = vld [vmem:[%s733_s6] sm:$0x1] }
  0x30   :  { %94 = vst [vmem:[#allocation3] sm:$0x1] %v93_v21  ;;  %v306_v24 = vld [vmem:[%s731_s4] sm:$0x1]  ;;  %s603_s4 = smov [#allocation12]  }
  0x31   :  { %s372_s6 = sshll.u32 %s603_s4, 4  ;;  %s373_s6 = int_to_ptr.vmem [resolvable:$true] %s372_s6 }
  0x32   :  { %430 = vmatpush3.bf16.msra.mxu0 %v479_v5  ;;  %450 = vmatpush3.bf16.msra.mxu1 %v480_v6  ;;  %s543_s20 = scalar_lea.vmem %s373_s6, 16  ;;  %s547_s21 = scalar_lea.vmem %s373_s6, 32 }
  0x33   :  { %431 = vmatprep.subr.bf16.mxu0 %v599_v0  ;;  %451 = vmatprep.subr.bf16.mxu1 %v599_v0  ;;  %v96_v17 = vld [vmem:[#allocation2] sm:$0x1]  ;;  %p544_p3 = scmp.ne.s32.totalorder %s373_s6, %s543_s20  ;;  %p548_p4 = scmp.lt.s32.totalorder %s373_s6, %s373_s6 }
  0x34   :  { %v97_v19 = vpack.c.bf16 %v96_v17, %v96_v17  ;;  %p549_p5 = scmp.lt.s32.totalorder %s547_s21, %s543_s20 }
  0x36   :  { %432 = vmatpush3.bf16.msra.mxu0 %v481_v7  ;;  %452 = vmatpush3.bf16.msra.mxu1 %v482_v8  ;;  %p550_p6 = por %p549_p5, %p548_p4 }
  0x37   :  { %433 = vmatprep.subr.bf16.mxu0 %v599_v0  ;;  %453 = vmatprep.subr.bf16.mxu1 %v599_v0  ;;  %v406_v34 = vld [vmem:[#allocation3] ss:$0 sm:$0xff] }
  0x38   :  { %p551_p7 = pnand %p550_p6, %p544_p3 }
  0x3a   :  { %434 = vmatpush3.bf16.msra.mxu0 %v483_v9  ;;  %454 = vmatpush3.bf16.msra.mxu1 %v484_v10 }
  0x3b   :  { %435 = vmatprep.subr.bf16.mxu0 %v599_v0  ;;  %455 = vmatprep.subr.bf16.mxu1 %v599_v0 }
  0x3e   :  { %436 = vmatpush3.bf16.msra.mxu0 %v485_v12  ;;  %456 = vmatpush3.bf16.msra.mxu1 %v486_v13 }
  0x3f   :  { %437 = vmatprep.subr.bf16.mxu0 %v599_v0  ;;  %457 = vmatprep.subr.bf16.mxu1 %v599_v0 }
  0x42   :  { %438 = vmatpush3.bf16.msra.mxu0 %v487_v14  ;;  %458 = vmatpush3.bf16.msra.mxu1 %v488_v15 }
  0x43   :  { %439 = vmatprep.subr.bf16.mxu0 %v599_v0  ;;  %459 = vmatprep.subr.bf16.mxu1 %v599_v0 }
  0x46   :  { %440 = vmatpush3.bf16.msra.mxu0 %v489_v16  ;;  %460 = vmatpush3.bf16.msra.mxu1 %v490_v18 }
  0x49   :  { %442 = vmatmul.mubr.bf16.vlgmr.msra.gmra.mrb[0].mxu0 %v97_v19  ;;  %462 = vmatmul.mubr.bf16.vlgmr.msra.gmra.mrb[0].mxu1 %v95_v20 }
 0x11c   :  { %v212_v22 = vpop.f32.mrb[0].mxu0  ;;  %v300_v23 = vpop.f32.mrb[0].mxu1 }
 0x11d   :  { %v443_v25 = vpop.f32.mrb[1].mxu0  ;;  %v301_v26 = vadd.f32 %v300_v23, %v212_v22  ;;  %v463_v27 = vpop.f32.mrb[1].mxu1 }
 0x11e   :  { %v215_v28 = vpop.f32.mrb[2].mxu0  ;;  %v303_v29 = vpop.f32.mrb[2].mxu1 }
 0x11f   :  { %v444_v30 = vpop.f32.mrb[3].mxu0  ;;  %v307_v31 = vadd.f32 %v306_v24, %v301_v26  ;;  %v464_v32 = vpop.f32.mrb[3].mxu1 }
 0x121   :  { %491 = vtanh.f32 %v307_v31  ;;  %v405_v35 = vmul.f32 -1.442695, %v307_v31 }
 0x123   :  { %493 = vpow2.f32 %v405_v35 }
 0x12b   :  { %v492_v33 = vpop.eup %491 }
 0x12c   :  { %326 = vrot.lane.b32.xlu0 %v492_v33, %s596_s15 }
 0x12d   :  { %v494_v36 = vpop.eup %493 }
 0x12e   :  { %v311_v37 = vadd.f32 1.0, %v494_v36 }
 0x130   :  { %321 = vrot.lane.b32.xlu0 %v406_v34, %s601_s0  ;;  %495 = vrcp.f32 %v311_v37 }
 0x13a   :  { %v496_v38 = vpop.eup %495 }
 0x19e   :  { %v327_v39 = vpop.permute.xlu0 %326 }
 0x19f   :  { %v329_v40 = vmul.f32 %v496_v38, %v327_v39 }
 0x1a1   :  { %331 = vrot.lane.b32.xlu1 %v329_v40, %s601_s0 }
 0x1a2   :  { %v322_v41 = vpop.permute.xlu0 %321 }
 0x1a3   :  { %v324_v42 = vmul.f32 %v496_v38, %v322_v41 }
 0x213   :  { %v332_v43 = vpop.permute.xlu1 %331 }
 0x214   :  { %v334_v44 = vadd.f32 %v332_v43, %v324_v42 }
 0x216   :  { %497 = vtanh.f32 %v334_v44  ;;  %342 = vrot.lane.b32.xlu0 %v334_v44, %s602_s1 }
 0x220   :  { %v498_v45 = vpop.eup %497 }
 0x221   :  { %337 = vrot.lane.b32.xlu1 %v498_v45, %s596_s15 }
 0x288   :  { %v343_v46 = vpop.permute.xlu0 %342 }
 0x289   :  { %346 = vst.msk [vmem:[#allocation3] sm:$0x1] %vm345_vm1, %v343_v46 }
 0x290   :  { %v354_v47 = vld [vmem:[#allocation3] sm:$0x1] }
 0x291   :  { %355 = vst [vmem:[#allocation12] sm:$0x1] %v354_v47 }
 0x292   :  { %554 = shalt.err (!%p551_p7)
}
 0x293   :  { %s555_s15 = scalar_lea.hbm %s735_s8, 16 }
 0x294   :  { %p556_p8 = scmp.ne.s32.totalorder %s735_s8, %s555_s15  ;;  %p559_p9 = scmp.lt.u32.totalorder %s555_s15, %s735_s8 }
 0x296   :  { %p561_p10 = pnand %p559_p9, %p556_p8 }
 0x298   :  { %564 = shalt.err (!%p561_p10)
}
 0x299   :  { %375 = dma.vmem_to_hbm [thread:$0]  %s373_s6, 16, %s735_s8, [#allocation13]   ;;  %v338_v48 = vpop.permute.xlu1 %337 }
 0x29a   :  { %v340_v49 = vmul.f32 %v496_v38, %v338_v48  ;;  %s604_s28 = smov [#allocation11]  }
 0x29b   :  { %s362_s3 = sshll.u32 %s604_s28, 4  ;;  %s363_s3 = int_to_ptr.vmem [resolvable:$true] %s362_s3 }
 0x29c   :  { %348 = vrot.lane.b32.xlu1 %v340_v49, %s601_s0  ;;  %s565_s30 = scalar_lea.vmem %s363_s3, 16  ;;  %s569_s9 = scalar_lea.vmem %s363_s3, 32 }
 0x29d   :  { %p566_p11 = scmp.ne.s32.totalorder %s363_s3, %s565_s30  ;;  %p570_p12 = scmp.lt.s32.totalorder %s363_s3, %s363_s3 }
 0x29e   :  { %p571_p13 = scmp.lt.s32.totalorder %s569_s9, %s565_s30 }
 0x2a0   :  { %p572_p0 = por %p571_p13, %p570_p12 }
 0x2a2   :  { %p573_p1 = pnand %p572_p0, %p566_p11 }
 0x30e   :  { %v349_v50 = vpop.permute.xlu1 %348 }
 0x30f   :  { %351 = vst.msk [vmem:[#allocation2] sm:$0x1] %vm345_vm1, %v349_v50 }
 0x316   :  { %v352_v51 = vld [vmem:[#allocation2] sm:$0x1] }
 0x317   :  { %353 = vst [vmem:[#allocation11] sm:$0x1] %v352_v51 }
 0x318   :  { %576 = shalt.err (!%p573_p1)
}
 0x319   :  { %s577_s11 = scalar_lea.hbm %s734_s7, 16 }
 0x31a   :  { %p578_p2 = scmp.ne.s32.totalorder %s734_s7, %s577_s11  ;;  %p581_p3 = scmp.lt.u32.totalorder %s577_s11, %s734_s7 }
 0x31c   :  { %p583_p4 = pnand %p581_p3, %p578_p2 }
 0x31e   :  { %586 = shalt.err (!%p583_p4)
}
 0x31f   :  { %365 = dma.vmem_to_hbm [thread:$0]  %s363_s3, 16, %s734_s7, [#allocation8]  }
 0x320   :  { %591 = dma.done.wait [#allocation8], 16  }
 0x321   :  { %592 = vsyncadd [#allocation8], 4294967280 }
 0x322   :  { %593 = dma.done.wait [#allocation13], 16  }
 0x323   :  { %594 = vsyncadd [#allocation13], 4294967280 }
 0x324   :  { %382 = vsyncpa [#allocation7], 1 }
 0x325   :  { %383 = vsyncpa [#allocation10], 1 }
 0x326   :  { %384 = vsyncpa [#allocation8], 1 }
 0x327   :  { %385 = vsyncpa [#allocation13], 1 }

</bundles_post_ra>
